<compile_context>
chip_gen: v7x
topology: tpu7x:2x2x1
jax: 0.10.0
libtpu: 0.0.40
codegen_flags: <defaults>
</compile_context>

<pallas_src>
import jax
import jax.numpy as jnp
from jax.experimental import pallas as pl
from jax.experimental.pallas import tpu as pltpu


def _round_up(x, m):
    return (x + m - 1) // m * m


def _qfunc_kernel(obs_ref, act_ref, w1o_ref, w1a_ref, b1_ref,
                  w2_ref, b2_ref, w3_ref, b3_ref, o_ref):
    """One batch tile of the 3-layer MLP Q function (bf16 MXU, f32 accum)."""
    # Layer 1: concat-free Linear (split weights) + bias + ReLU (f32).
    h1 = (jnp.dot(obs_ref[...], w1o_ref[...], preferred_element_type=jnp.float32)
          + jnp.dot(act_ref[...], w1a_ref[...], preferred_element_type=jnp.float32)
          + b1_ref[...])                                   # [tb, H1] f32
    h1 = jnp.maximum(h1, 0.0).astype(jnp.bfloat16)

    # Layer 2: Linear + bias + ReLU (f32 elementwise).
    h2 = jnp.dot(h1, w2_ref[...], preferred_element_type=jnp.float32) + b2_ref[...]
    h2 = jnp.maximum(h2, 0.0).astype(jnp.bfloat16)         # [tb, H2]

    # Layer 3 (out_features == 1): contract w3_row [1, H2] with h2 [tb, H2]
    # over H2 (i.e. w3 @ h2^T) -> lane-dense [1, tb].  This avoids producing a
    # [tb, 1] column and the masked partial stores it would force.
    q_row = jax.lax.dot_general(
        w3_ref[...], h2,
        dimension_numbers=(((1,), (1,)), ((), ())),
        preferred_element_type=jnp.float32)                # [1, tb]
    o_ref[...] = (q_row + b3_ref[...]).astype(o_ref.dtype)


def mlp_q_function(obs, act, params, *, tile_b=None):
    """Forward pass of MLPQFunction. Returns q with shape [B]."""
    B, obs_dim = obs.shape
    act_dim = act.shape[-1]
    (w1, b1), (w2, b2), (w3, b3) = params
    H1, H2 = w1.shape[0], w2.shape[0]

    # --- glue (wrapper side): layout + dtype prep, batch padding -------------
    # torch.nn.Linear stores W as [out, in]; the kernel wants [in, out].  Split
    # W1 along its input axis so obs/act never need a concatenated HBM copy.
    w1t = w1.T
    w1o = w1t[:obs_dim].astype(jnp.bfloat16)               # [obs_dim, H1]
    w1a = w1t[obs_dim:].astype(jnp.bfloat16)               # [act_dim, H1]
    w2t = w2.T.astype(jnp.bfloat16)                        # [H1, H2]
    w3r = w3.astype(jnp.bfloat16)                          # [1, H2] (already [out, in])
    b1r = b1.reshape(1, H1).astype(jnp.float32)
    b2r = b2.reshape(1, H2).astype(jnp.float32)
    b3r = b3.reshape(1, 1).astype(jnp.float32)

    obs_b = obs.astype(jnp.bfloat16)
    act_b = act.astype(jnp.bfloat16)

    if tile_b is None:
        # Large batch tiles amortize per-grid-step overhead; even a [1024, D]
        # bf16 tile is far below the scoped-VMEM limit on v5e/v6e/v7x.
        tile_b = min(1024, _round_up(B, 128))
    tile_b = max(128, _round_up(tile_b, 128))              # lane-friendly tiles
    B_pad = _round_up(B, tile_b)
    if B_pad != B:
        pad = ((0, B_pad - B), (0, 0))
        obs_b = jnp.pad(obs_b, pad)
        act_b = jnp.pad(act_b, pad)

    grid = (B_pad // tile_b,)

    def resident(arr):  # small params stay fully resident in VMEM
        return pl.BlockSpec(arr.shape, lambda i: (0, 0))

    q_row = pl.pallas_call(
        _qfunc_kernel,
        out_shape=jax.ShapeDtypeStruct((1, B_pad), jnp.float32),
        grid_spec=pltpu.PrefetchScalarGridSpec(
            num_scalar_prefetch=0,
            grid=grid,
            in_specs=[
                pl.BlockSpec((tile_b, obs_dim), lambda i: (i, 0)),   # obs tile
                pl.BlockSpec((tile_b, act_dim), lambda i: (i, 0)),   # act tile
                resident(w1o), resident(w1a), resident(b1r),
                resident(w2t), resident(b2r),
                resident(w3r), resident(b3r),
            ],
            out_specs=pl.BlockSpec((1, tile_b), lambda i: (0, i)),   # lane-dense row
        ),
        compiler_params=pltpu.CompilerParams(
            dimension_semantics=("parallel",)),
    )(obs_b, act_b, w1o, w1a, b1r, w2t, b2r, w3r, b3r)

    return q_row[0, :B]                                    # [B]


def init_params(key, obs_dim, act_dim, hidden_sizes):
    """Deterministic synthetic init mirroring nn.Linear shapes: W [out, in], b [out]."""
    sizes = [obs_dim + act_dim] + list(hidden_sizes) + [1]
    params = []
    for j in range(len(sizes) - 1):
        key, kw, kb = jax.random.split(key, 3)
        fan_in = sizes[j]
        bound = 1.0 / jnp.sqrt(fan_in)
        w = jax.random.uniform(kw, (sizes[j + 1], sizes[j]),
                               minval=-bound, maxval=bound, dtype=jnp.float32)
        b = jax.random.uniform(kb, (sizes[j + 1],),
                               minval=-bound, maxval=bound, dtype=jnp.float32)
        params.append((w, b))
    return params


def _reference_f32(obs, act, params):
    """Pure-f32 reference matching the PyTorch module semantics."""
    x = jnp.concatenate([obs, act], axis=-1)
    (w1, b1), (w2, b2), (w3, b3) = params
    h = jnp.maximum(x @ w1.T + b1, 0.0)
    h = jnp.maximum(h @ w2.T + b2, 0.0)
    return jnp.squeeze(h @ w3.T + b3, -1)


def _reference_matched(obs, act, params):
    """Pure-JAX reference mirroring the kernel's bf16-input / f32-accum math."""
    (w1, b1), (w2, b2), (w3, b3) = params
    obs_dim = obs.shape[-1]
    w1t = w1.T
    h1 = (jnp.dot(obs.astype(jnp.bfloat16), w1t[:obs_dim].astype(jnp.bfloat16),
                  preferred_element_type=jnp.float32)
          + jnp.dot(act.astype(jnp.bfloat16), w1t[obs_dim:].astype(jnp.bfloat16),
                    preferred_element_type=jnp.float32)
          + b1)
    h1 = jnp.maximum(h1, 0.0).astype(jnp.bfloat16)
    h2 = jnp.dot(h1, w2.T.astype(jnp.bfloat16),
                 preferred_element_type=jnp.float32) + b2
    h2 = jnp.maximum(h2, 0.0).astype(jnp.bfloat16)
    q = jnp.dot(h2, w3.astype(jnp.bfloat16).T,
                preferred_element_type=jnp.float32) + b3
    return jnp.squeeze(q, -1)


if __name__ == "__main__":
    key = jax.random.PRNGKey(0)
    obs_dim, act_dim = 24, 8            # concat dim = 32
    hidden_sizes = (32, 32)
    B = 16

    kp, ko, ka = jax.random.split(key, 3)
    params = init_params(kp, obs_dim, act_dim, hidden_sizes)
    obs = jax.random.normal(ko, (B, obs_dim), dtype=jnp.float32)
    act = jax.random.normal(ka, (B, act_dim), dtype=jnp.float32)

    q = mlp_q_function(obs, act, params)
    q = jax.block_until_ready(q)
    assert q.shape == (B,), q.shape

    # Tight check vs. a precision-matched pure-JAX reference (same bf16 casts,
    # f32 accumulation), loose check vs. the pure-f32 PyTorch-equivalent math.
    q_matched = _reference_matched(obs, act, params)
    q_f32 = _reference_f32(obs, act, params)
    assert jnp.allclose(q, q_matched, atol=2e-3, rtol=2e-3), (q, q_matched)
    assert jnp.allclose(q, q_f32, atol=1e-1, rtol=1e-1), (q, q_f32)

    print("KERNEL_OK")
</pallas_src>

<mosaic_0001>
module attributes {stable_mosaic.version = 11 : i64} {
  func.func @_qfunc_kernel(%arg0: i32, %arg1: memref<128x24xbf16, #tpu.memory_space<vmem>>, %arg2: memref<128x8xbf16, #tpu.memory_space<vmem>>, %arg3: memref<24x32xbf16, #tpu.memory_space<vmem>>, %arg4: memref<8x32xbf16, #tpu.memory_space<vmem>>, %arg5: memref<1x32xf32, #tpu.memory_space<vmem>>, %arg6: memref<32x32xbf16, #tpu.memory_space<vmem>>, %arg7: memref<1x32xf32, #tpu.memory_space<vmem>>, %arg8: memref<1x32xbf16, #tpu.memory_space<vmem>>, %arg9: memref<1x1xf32, #tpu.memory_space<vmem>>, %arg10: memref<1x128xf32, #tpu.memory_space<vmem>>) attributes {dimension_semantics = [#tpu.dimension_semantics<parallel>], iteration_bounds = array<i64: 1>, scalar_prefetch = 0 : i64, scratch_operands = 0 : i64, tpu.core_type = #tpu.core_type<tc>, window_params = [{transform_indices = @transform_0, window_bounds = array<i64: 128, 24>}, {transform_indices = @transform_1, window_bounds = array<i64: 128, 8>}, {pipeline_mode = #tpu.pipeline_mode<synchronous>, transform_indices = @transform_2, window_bounds = array<i64: 24, 32>}, {pipeline_mode = #tpu.pipeline_mode<synchronous>, transform_indices = @transform_3, window_bounds = array<i64: 8, 32>}, {pipeline_mode = #tpu.pipeline_mode<synchronous>, transform_indices = @transform_4, window_bounds = array<i64: 1, 32>}, {pipeline_mode = #tpu.pipeline_mode<synchronous>, transform_indices = @transform_5, window_bounds = array<i64: 32, 32>}, {pipeline_mode = #tpu.pipeline_mode<synchronous>, transform_indices = @transform_6, window_bounds = array<i64: 1, 32>}, {pipeline_mode = #tpu.pipeline_mode<synchronous>, transform_indices = @transform_7, window_bounds = array<i64: 1, 32>}, {pipeline_mode = #tpu.pipeline_mode<synchronous>, transform_indices = @transform_8, window_bounds = array<i64: 1, 1>}, {transform_indices = @transform_9, window_bounds = array<i64: 1, 128>}]} {
    %c0 = arith.constant 0 : index
    %c0_0 = arith.constant 0 : index
    %0 = vector.load %arg1[%c0, %c0_0] : memref<128x24xbf16, #tpu.memory_space<vmem>>, vector<128x24xbf16>
    %c0_1 = arith.constant 0 : index
    %c0_2 = arith.constant 0 : index
    %1 = vector.load %arg3[%c0_1, %c0_2] : memref<24x32xbf16, #tpu.memory_space<vmem>>, vector<24x32xbf16>
    %cst = arith.constant dense<0.000000e+00> : vector<128x32xf32>
    %2 = tpu.matmul %0, %1, %cst {dimension_numbers = #tpu.dot_dimension_numbers<[1], [0], [0], [1], [0, 0, 1, 1], [], []>} : vector<128x24xbf16>, vector<24x32xbf16>, vector<128x32xf32> -> vector<128x32xf32>
    %c0_3 = arith.constant 0 : index
    %c0_4 = arith.constant 0 : index
    %3 = vector.load %arg2[%c0_3, %c0_4] : memref<128x8xbf16, #tpu.memory_space<vmem>>, vector<128x8xbf16>
    %c0_5 = arith.constant 0 : index
    %c0_6 = arith.constant 0 : index
    %4 = vector.load %arg4[%c0_5, %c0_6] : memref<8x32xbf16, #tpu.memory_space<vmem>>, vector<8x32xbf16>
    %cst_7 = arith.constant dense<0.000000e+00> : vector<128x32xf32>
    %5 = tpu.matmul %3, %4, %cst_7 {dimension_numbers = #tpu.dot_dimension_numbers<[1], [0], [0], [1], [0, 0, 1, 1], [], []>} : vector<128x8xbf16>, vector<8x32xbf16>, vector<128x32xf32> -> vector<128x32xf32>
    %6 = arith.addf %2, %5 : vector<128x32xf32>
    %c0_8 = arith.constant 0 : index
    %c0_9 = arith.constant 0 : index
    %7 = vector.load %arg5[%c0_8, %c0_9] : memref<1x32xf32, #tpu.memory_space<vmem>>, vector<1x32xf32>
    %8 = vector.broadcast %7 : vector<1x32xf32> to vector<128x32xf32>
    %9 = arith.addf %6, %8 : vector<128x32xf32>
    %cst_10 = arith.constant 0.000000e+00 : f32
    %10 = vector.broadcast %cst_10 : f32 to vector<128x32xf32>
    %11 = arith.maximumf %9, %10 : vector<128x32xf32>
    %12 = arith.truncf %11 : vector<128x32xf32> to vector<128x32xbf16>
    %c0_11 = arith.constant 0 : index
    %c0_12 = arith.constant 0 : index
    %13 = vector.load %arg6[%c0_11, %c0_12] : memref<32x32xbf16, #tpu.memory_space<vmem>>, vector<32x32xbf16>
    %cst_13 = arith.constant dense<0.000000e+00> : vector<128x32xf32>
    %14 = tpu.matmul %12, %13, %cst_13 {dimension_numbers = #tpu.dot_dimension_numbers<[1], [0], [0], [1], [0, 0, 1, 1], [], []>} : vector<128x32xbf16>, vector<32x32xbf16>, vector<128x32xf32> -> vector<128x32xf32>
    %c0_14 = arith.constant 0 : index
    %c0_15 = arith.constant 0 : index
    %15 = vector.load %arg7[%c0_14, %c0_15] : memref<1x32xf32, #tpu.memory_space<vmem>>, vector<1x32xf32>
    %16 = vector.broadcast %15 : vector<1x32xf32> to vector<128x32xf32>
    %17 = arith.addf %14, %16 : vector<128x32xf32>
    %cst_16 = arith.constant 0.000000e+00 : f32
    %18 = vector.broadcast %cst_16 : f32 to vector<128x32xf32>
    %19 = arith.maximumf %17, %18 : vector<128x32xf32>
    %20 = arith.truncf %19 : vector<128x32xf32> to vector<128x32xbf16>
    %c0_17 = arith.constant 0 : index
    %c0_18 = arith.constant 0 : index
    %21 = vector.load %arg8[%c0_17, %c0_18] : memref<1x32xbf16, #tpu.memory_space<vmem>>, vector<1x32xbf16>
    %cst_19 = arith.constant dense<0.000000e+00> : vector<1x128xf32>
    %22 = tpu.matmul %21, %20, %cst_19 {dimension_numbers = #tpu.dot_dimension_numbers<[1], [1], [0], [0], [0, 0, 1, 0], [], []>} : vector<1x32xbf16>, vector<128x32xbf16>, vector<1x128xf32> -> vector<1x128xf32>
    %c0_20 = arith.constant 0 : index
    %c0_21 = arith.constant 0 : index
    %23 = vector.load %arg9[%c0_20, %c0_21] : memref<1x1xf32, #tpu.memory_space<vmem>>, vector<1x1xf32>
    %24 = vector.broadcast %23 : vector<1x1xf32> to vector<1x128xf32>
    %25 = arith.addf %22, %24 : vector<1x128xf32>
    %c0_22 = arith.constant 0 : index
    %c0_23 = arith.constant 0 : index
    %26 = vector.load %arg10[%c0_22, %c0_23] : memref<1x128xf32, #tpu.memory_space<vmem>>, vector<1x128xf32>
    tpu.vector_store %arg10[%c0_22, %c0_23], %25 {strides = array<i32>} : memref<1x128xf32, #tpu.memory_space<vmem>>, vector<1x128xf32>,
    return
  }
  func.func @transform_0(%arg0: i32) -> (i32, i32) {
    %c0_i32 = arith.constant 0 : i32
    %c0_i32_0 = arith.constant 0 : i32
    return %arg0, %c0_i32 : i32, i32
  }
  func.func @transform_1(%arg0: i32) -> (i32, i32) {
    %c0_i32 = arith.constant 0 : i32
    %c0_i32_0 = arith.constant 0 : i32
    return %arg0, %c0_i32 : i32, i32
  }
  func.func @transform_2(%arg0: i32) -> (i32, i32) {
    %c0_i32 = arith.constant 0 : i32
    %c0_i32_0 = arith.constant 0 : i32
    %c0_i32_1 = arith.constant 0 : i32
    return %c0_i32, %c0_i32_0 : i32, i32
  }
  func.func @transform_3(%arg0: i32) -> (i32, i32) {
    %c0_i32 = arith.constant 0 : i32
    %c0_i32_0 = arith.constant 0 : i32
    %c0_i32_1 = arith.constant 0 : i32
    return %c0_i32, %c0_i32_0 : i32, i32
  }
  func.func @transform_4(%arg0: i32) -> (i32, i32) {
    %c0_i32 = arith.constant 0 : i32
    %c0_i32_0 = arith.constant 0 : i32
    %c0_i32_1 = arith.constant 0 : i32
    return %c0_i32, %c0_i32_0 : i32, i32
  }
  func.func @transform_5(%arg0: i32) -> (i32, i32) {
    %c0_i32 = arith.constant 0 : i32
    %c0_i32_0 = arith.constant 0 : i32
    %c0_i32_1 = arith.constant 0 : i32
    return %c0_i32, %c0_i32_0 : i32, i32
  }
  func.func @transform_6(%arg0: i32) -> (i32, i32) {
    %c0_i32 = arith.constant 0 : i32
    %c0_i32_0 = arith.constant 0 : i32
    %c0_i32_1 = arith.constant 0 : i32
    return %c0_i32, %c0_i32_0 : i32, i32
  }
  func.func @transform_7(%arg0: i32) -> (i32, i32) {
    %c0_i32 = arith.constant 0 : i32
    %c0_i32_0 = arith.constant 0 : i32
    %c0_i32_1 = arith.constant 0 : i32
    return %c0_i32, %c0_i32_0 : i32, i32
  }
  func.func @transform_8(%arg0: i32) -> (i32, i32) {
    %c0_i32 = arith.constant 0 : i32
    %c0_i32_0 = arith.constant 0 : i32
    %c0_i32_1 = arith.constant 0 : i32
    return %c0_i32, %c0_i32_0 : i32, i32
  }
  func.func @transform_9(%arg0: i32) -> (i32, i32) {
    %c0_i32 = arith.constant 0 : i32
    %c0_i32_0 = arith.constant 0 : i32
    return %c0_i32, %arg0 : i32, i32
  }
}

</mosaic_0001>

<bundles_post_ra>
// kernel: tpu_custom_call.1
= control target key start
LH: loop header
LB: loop body
LE: loop exit
PB: predicated region body
PF: predicated region fallthrough
CT: control target
= control target key end

     0   :  { %s1138_s0 = inlined_call_operand.vmem [shape: bf16[128,24], index: 0, kind: input, shape index: {}]   ;;  %s1139_s1 = inlined_call_operand.vmem [shape: bf16[128,8], index: 1, kind: input, shape index: {}]   ;;  %s1140_s2 = inlined_call_operand.vmem [shape: bf16[24,32], index: 2, kind: input, shape index: {}]   ;;  %s1141_s3 = inlined_call_operand.vmem [shape: bf16[8,32], index: 3, kind: input, shape index: {}]   ;;  %s1142_s4 = inlined_call_operand.vmem [shape: f32[1,32], index: 4, kind: input, shape index: {}]   ;;  %s1143_s5 = inlined_call_operand.vmem [shape: bf16[32,32], index: 5, kind: input, shape index: {}]   ;;  %s1144_s6 = inlined_call_operand.vmem [shape: f32[1,32], index: 6, kind: input, shape index: {}]   ;;  %s1145_s7 = inlined_call_operand.vmem [shape: bf16[1,32], index: 7, kind: input, shape index: {}]   ;;  %s1146_s8 = inlined_call_operand.<no memory space> [shape: f32[1,1], index: 8, kind: input, shape index: {}]   ;;  %s1147_s9 = inlined_call_operand.hbm [shape: f32[1,128], index: 9, kind: output, shape index: {}]  }
   0x1   :  { %v14_v0 = vstv %s1146_s8 }
   0x2   :  { %15 = vst [vmem:[#allocation2] sm:$0x1] %v14_v0 }
   0x3   :  { %v71_v1 = vld [vmem:[%s1141_s3] sm:$0xf]  ;;  %vm137_vm0 = vcmask 1043456   ;;  %vm112_vm1 = vcmask 64512   ;;  %v908_v4 = vld [vmem:[%s1139_s1 + $0x8] sm:$0xff]   ;;  %v910_v6 = vld [vmem:[%s1139_s1 + $0x10] sm:$0xff]  }
   0x4   :  { %v907_v2 = vld [vmem:[%s1139_s1] sm:$0xff]   ;;  %900 = vmatprep.subr.msk.bf16.mxu0 %vm137_vm0, %v71_v1  ;;  %v139_v3 = vsel %vm137_vm0, %v71_v1, 0  ;;  %v914_v7 = vld [vmem:[%s1140_s2 + $0x8] ss:$0 sps:$4 sm:$0xff]   ;;  %v911_v8 = vld [vmem:[%s1139_s1 + $0x18] sm:$0xff]  }
   0x5   :  { %807 = vmatpush3.bf16.msra.mxu0 %v139_v3  ;;  %808 = vmatprep.mubr.msk.bf16.mxu0 %vm112_vm1, %v907_v2  ;;  %v909_v5 = vld [vmem:[%s1140_s2] sm:$0xff]   ;;  %v313_v10 = vsel %vm137_vm0, %v914_v7, 0  ;;  %v913_v11 = vld [vmem:[%s1139_s1 + $0x28] sm:$0xff]   ;;  %v915_v12 = vld [vmem:[%s1139_s1 + $0x30] sm:$0xff]  }
   0x6   :  { %824 = vmatprep.subr.bf16.mxu0 %v909_v5  ;;  %v912_v9 = vld [vmem:[%s1139_s1 + $0x20] sm:$0xff]  }
   0x8   :  { %809 = vmatmul.mubr.msk.bf16.vlgmr.msra.gmra.mrb[0].mxu0 %vm112_vm1, %v908_v4 }
   0x9   :  { %825 = vmatpush3.bf16.msra.mxu0 %v909_v5  ;;  %812 = vmatprep.mubr.msk.bf16.mxu0 %vm112_vm1, %v910_v6 }
   0xa   :  { %901 = vmatprep.subr.msk.bf16.mxu0 %vm137_vm0, %v914_v7 }
   0xd   :  { %827 = vmatpush3.bf16.msra.mxu0 %v313_v10 }
  0x10   :  { %813 = vmatmul.mubr.msk.bf16.gmra.mrb[4].mxu0 %vm112_vm1, %v911_v8 }
  0x11   :  { %816 = vmatprep.mubr.msk.bf16.mxu0 %vm112_vm1, %v912_v9 }
  0x12   :  { %16 = vsyncpa [#allocation4], 0  ;;  %v916_v13 = vld [vmem:[%s1139_s1 + $0x38] sm:$0xff]   ;;  %v917_v14 = vld [vmem:[%s1138_s0] sm:$0xff]   ;;  %vm287_vm2 = vcmask 195584   ;;  %vm482_vm3 = vcmask 261120  }
  0x13   :  { %v918_v15 = vld [vmem:[%s1138_s0 + $0x8] sm:$0xff]   ;;  %v919_v16 = vld [vmem:[%s1138_s0 + $0x10] sm:$0xff]   ;;  %v920_v17 = vld [vmem:[%s1138_s0 + $0x18] sm:$0xff]   ;;  %vm952_vm4 = vmmov 0   ;;  %s954_s27 = smov [#allocation3]  }
  0x14   :  { %v921_v18 = vld [vmem:[%s1138_s0 + $0x20] sm:$0xff]   ;;  %v922_v19 = vld [vmem:[%s1138_s0 + $0x28] sm:$0xff]   ;;  %v923_v20 = vld [vmem:[%s1138_s0 + $0x30] sm:$0xff]   ;;  %s713_s28 = sshll.u32 %s954_s27, 4  ;;  %s714_s28 = int_to_ptr.vmem [resolvable:$true] %s713_s28 }
  0x15   :  { %v924_v21 = vld [vmem:[%s1138_s0 + $0x38] sm:$0xff]   ;;  %v925_v22 = vld [vmem:[%s1143_s5] sm:$0xff]   ;;  %v926_v23 = vld [vmem:[%s1143_s5 + $0x8] sm:$0xff]   ;;  %s927_s29 = scalar_lea.vmem %s714_s28, 16  ;;  %s931_s30 = scalar_lea.vmem %s714_s28, 32 }
  0x16   :  { %844 = vmatprep.subr.bf16.mxu1 %v925_v22  ;;  %v755_v24 = vld [vmem:[%s1142_s4] ss:$0 sm:$0xff]  ;;  %p928_p0 = scmp.ne.s32.totalorder %s714_s28, %s927_s29  ;;  %p932_p1 = scmp.lt.s32.totalorder %s714_s28, %s714_s28 }
  0x17   :  { %845 = vmatpush3.bf16.msra.mxu1 %v925_v22  ;;  %p933_p2 = scmp.lt.s32.totalorder %s931_s30, %s927_s29 }
  0x18   :  { %817 = vmatmul.mubr.msk.bf16.gmra.mrb[8].mxu0 %vm112_vm1, %v913_v11  ;;  %846 = vmatprep.subr.bf16.mxu1 %v926_v23 }
  0x19   :  { %820 = vmatprep.mubr.msk.bf16.mxu0 %vm112_vm1, %v915_v12  ;;  %p934_p3 = por %p933_p2, %p932_p1 }
  0x1b   :  { %847 = vmatpush3.bf16.msra.mxu1 %v926_v23  ;;  %p935_p4 = pnand %p934_p3, %p928_p0 }
  0x20   :  { %821 = vmatmul.mubr.msk.bf16.gmra.mrb[12].mxu0 %vm112_vm1, %v916_v13 }
  0x21   :  { %828 = vmatprep.mubr.msk.bf16.mxu0 %vm287_vm2, %v917_v14 }
  0x28   :  { %829 = vmatmul.mubr.msk.bf16.vlgmr.msra.gmra.mrb[0].mxu0 %vm287_vm2, %v918_v15 }
  0x29   :  { %832 = vmatprep.mubr.msk.bf16.mxu0 %vm287_vm2, %v919_v16 }
  0x30   :  { %833 = vmatmul.mubr.msk.bf16.gmra.mrb[4].mxu0 %vm287_vm2, %v920_v17  ;;  %v951_v17 = vmov 0.0  }
  0x31   :  { %836 = vmatprep.mubr.msk.bf16.mxu0 %vm287_vm2, %v921_v18  ;;  %864 = vmatprep.subr.bf16.mxu1 %v951_v17  ;;  %v629_v18 = vld [vmem:[#allocation2] sm:$0x1] }
  0x38   :  { %837 = vmatmul.mubr.msk.bf16.gmra.mrb[8].mxu0 %vm287_vm2, %v922_v19  ;;  %v953_v19 = vmov 0  }
  0x39   :  { %840 = vmatprep.mubr.msk.bf16.mxu0 %vm287_vm2, %v923_v20  ;;  %906 = vset.pattern.permute.xlu0 %v953_v19  ;;  %v756_v20 = vld [vmem:[%s1144_s6] ss:$0 sm:$0xff] }
  0x3a   :  { %632 = vperm.xlu0 %906, %v629_v18  }
  0x40   :  { %841 = vmatmul.mubr.msk.bf16.gmra.mrb[12].mxu0 %vm287_vm2, %v924_v21 }
  0xfb   :  { %v830_v25 = vpop.f32.mrb[0].mxu0 }
  0xfc   :  { %v421_v26 = vadd.f32 %v830_v25, %v755_v24  ;;  %v349_v27 = vpop.f32.mrb[1].mxu0 }
  0xfd   :  { %v419_v28 = vadd.f32 %v755_v24, %v349_v27  ;;  %v831_v29 = vpop.f32.mrb[2].mxu0 }
  0xfe   :  { %v422_v30 = vadd.f32 %v831_v29, %v755_v24  ;;  %v352_v31 = vpop.f32.mrb[3].mxu0  ;;  %v437_v33 = vmax.f32 %v421_v26, 0.0 }
  0xff   :  { %v420_v32 = vadd.f32 %v755_v24, %v352_v31  ;;  %v435_v35 = vmax.f32 %v419_v28, 0.0 }
 0x100   :  { %v438_v34 = vmax.f32 %v422_v30, 0.0 }
 0x101   :  { %v436_v36 = vmax.f32 %v420_v32, 0.0 }
 0x102   :  { %v452_v37 = vpack.c.bf16 %v438_v34, %v437_v33 }
 0x103   :  { %v834_v38 = vpop.f32.mrb[4].mxu0  ;;  %v451_v39 = vpack.c.bf16 %v436_v36, %v435_v35 }
 0x104   :  { %v425_v40 = vadd.f32 %v834_v38, %v755_v24  ;;  %v365_v41 = vpop.f32.mrb[5].mxu0 }
 0x105   :  { %v423_v42 = vadd.f32 %v755_v24, %v365_v41  ;;  %v835_v43 = vpop.f32.mrb[6].mxu0  ;;  %848 = vmatprep.mubr.msk.bf16.mxu1 %vm482_vm3, %v451_v39 }
 0x106   :  { %v426_v44 = vadd.f32 %v835_v43, %v755_v24  ;;  %v368_v45 = vpop.f32.mrb[7].mxu0  ;;  %849 = vmatmul.mubr.msk.bf16.vlgmr.msra.gmra.mrb[0].mxu1 %vm482_vm3, %v452_v37  ;;  %v441_v47 = vmax.f32 %v425_v40, 0.0 }
 0x107   :  { %v424_v46 = vadd.f32 %v755_v24, %v368_v45  ;;  %v439_v49 = vmax.f32 %v423_v42, 0.0 }
 0x108   :  { %v442_v48 = vmax.f32 %v426_v44, 0.0 }
 0x109   :  { %v440_v50 = vmax.f32 %v424_v46, 0.0 }
 0x10a   :  { %v454_v51 = vpack.c.bf16 %v442_v48, %v441_v47 }
 0x10b   :  { %v453_v52 = vpack.c.bf16 %v440_v50, %v439_v49  ;;  %v838_v53 = vpop.f32.mrb[8].mxu0 }
 0x10c   :  { %v429_v54 = vadd.f32 %v838_v53, %v755_v24  ;;  %v381_v55 = vpop.f32.mrb[9].mxu0 }
 0x10d   :  { %v427_v56 = vadd.f32 %v755_v24, %v381_v55  ;;  %v839_v57 = vpop.f32.mrb[10].mxu0  ;;  %852 = vmatprep.mubr.msk.bf16.mxu1 %vm482_vm3, %v453_v52 }
 0x10e   :  { %v430_v58 = vadd.f32 %v839_v57, %v755_v24  ;;  %v384_v59 = vpop.f32.mrb[11].mxu0  ;;  %853 = vmatmul.mubr.msk.bf16.gmra.mrb[4].mxu1 %vm482_vm3, %v454_v51  ;;  %v445_v61 = vmax.f32 %v429_v54, 0.0 }
 0x10f   :  { %v428_v60 = vadd.f32 %v755_v24, %v384_v59  ;;  %v443_v63 = vmax.f32 %v427_v56, 0.0 }
 0x110   :  { %v446_v62 = vmax.f32 %v430_v58, 0.0 }
 0x111   :  { %v444_v0 = vmax.f32 %v428_v60, 0.0 }
 0x112   :  { %v456_v1 = vpack.c.bf16 %v446_v62, %v445_v61 }
 0x113   :  { %v455_v2 = vpack.c.bf16 %v444_v0, %v443_v63  ;;  %v842_v3 = vpop.f32.mrb[12].mxu0 }
 0x114   :  { %v433_v4 = vadd.f32 %v842_v3, %v755_v24  ;;  %v397_v5 = vpop.f32.mrb[13].mxu0 }
 0x115   :  { %v431_v6 = vadd.f32 %v755_v24, %v397_v5  ;;  %v843_v7 = vpop.f32.mrb[14].mxu0  ;;  %856 = vmatprep.mubr.msk.bf16.mxu1 %vm482_vm3, %v455_v2 }
 0x116   :  { %v434_v8 = vadd.f32 %v843_v7, %v755_v24  ;;  %v400_v9 = vpop.f32.mrb[15].mxu0  ;;  %857 = vmatmul.mubr.msk.bf16.gmra.mrb[8].mxu1 %vm482_vm3, %v456_v1  ;;  %v449_v11 = vmax.f32 %v433_v4, 0.0 }
 0x117   :  { %v432_v10 = vadd.f32 %v755_v24, %v400_v9  ;;  %v447_v13 = vmax.f32 %v431_v6, 0.0 }
 0x118   :  { %v450_v12 = vmax.f32 %v434_v8, 0.0 }
 0x119   :  { %v448_v14 = vmax.f32 %v432_v10, 0.0 }
 0x11a   :  { %v458_v15 = vpack.c.bf16 %v450_v12, %v449_v11 }
 0x11b   :  { %v457_v16 = vpack.c.bf16 %v448_v14, %v447_v13 }
 0x11d   :  { %860 = vmatprep.mubr.msk.bf16.mxu1 %vm482_vm3, %v457_v16 }
 0x11e   :  { %861 = vmatmul.mubr.msk.bf16.gmra.mrb[12].mxu1 %vm482_vm3, %v458_v15 }
 0x11f   :  { %880 = vmatprep.mubr.msk.bf16.mxu1 %vm952_vm4, %v951_v17 }
 0x1d9   :  { %v850_v21 = vpop.f32.mrb[0].mxu1 }
 0x1da   :  { %v550_v22 = vadd.f32 %v850_v21, %v756_v20  ;;  %v541_v23 = vpop.f32.mrb[1].mxu1 }
 0x1db   :  { %v542_v24 = vadd.f32 %v756_v20, %v541_v23  ;;  %v851_v25 = vpop.f32.mrb[2].mxu1  ;;  %v635_v23 = vlaneseq }
 0x1dc   :  { %v553_v26 = vadd.f32 %v851_v25, %v756_v20  ;;  %v544_v27 = vpop.f32.mrb[3].mxu1  ;;  %v606_v29 = vmax.f32 %v550_v22, 0.0  ;;  %v628_v22 = vld [vmem:[%s1145_s7] sm:$0x1] }
 0x1dd   :  { %v545_v28 = vadd.f32 %v756_v20, %v544_v27  ;;  %v604_v31 = vmax.f32 %v542_v24, 0.0  ;;  %v636_v24 = vshrl.u32 %v635_v23, 7 }
 0x1de   :  { %v607_v30 = vmax.f32 %v553_v26, 0.0  ;;  %v633_v26 = vpop.permute.xlu0 %632 }
 0x1df   :  { %v605_v32 = vmax.f32 %v545_v28, 0.0  ;;  %v637_v25 = vsub.s32 0, %v636_v24 }
 0x1e0   :  { %v621_v33 = vpack.c.bf16 %v607_v30, %v606_v29 }
 0x1e1   :  { %v620_v34 = vpack.c.bf16 %v605_v32, %v604_v31  ;;  %v854_v35 = vpop.f32.mrb[4].mxu1  ;;  %v638_v27 = vrot.slane %v633_v26, %v637_v25 }
 0x1e2   :  { %v566_v36 = vadd.f32 %v854_v35, %v756_v20  ;;  %v557_v37 = vpop.f32.mrb[5].mxu1  ;;  %v646_v55 = vsel %vm482_vm3, %v621_v33, 0 }
 0x1e3   :  { %v558_v38 = vadd.f32 %v756_v20, %v557_v37  ;;  %v855_v39 = vpop.f32.mrb[6].mxu1  ;;  %v643_v40 = vsel %vm482_vm3, %v620_v34, 0 }
 0x1e4   :  { %v569_v41 = vadd.f32 %v855_v39, %v756_v20  ;;  %v560_v42 = vpop.f32.mrb[7].mxu1  ;;  %865 = vmatpush3.bf16.xpose.msra.mxu1 %v643_v40  ;;  %v610_v44 = vmax.f32 %v566_v36, 0.0 }
 0x1e5   :  { %v561_v43 = vadd.f32 %v756_v20, %v560_v42  ;;  %866 = vmatprep.subr.bf16.mxu1 %v951_v17  ;;  %v608_v46 = vmax.f32 %v558_v38, 0.0 }
 0x1e6   :  { %v611_v45 = vmax.f32 %v569_v41, 0.0 }
 0x1e7   :  { %v609_v47 = vmax.f32 %v561_v43, 0.0 }
 0x1e8   :  { %v623_v48 = vpack.c.bf16 %v611_v45, %v610_v44 }
 0x1e9   :  { %v622_v49 = vpack.c.bf16 %v609_v47, %v608_v46  ;;  %v858_v50 = vpop.f32.mrb[8].mxu1 }
 0x1ea   :  { %v582_v51 = vadd.f32 %v858_v50, %v756_v20  ;;  %v573_v52 = vpop.f32.mrb[9].mxu1  ;;  %v652_v16 = vsel %vm482_vm3, %v623_v48, 0 }
 0x1eb   :  { %v574_v53 = vadd.f32 %v756_v20, %v573_v52  ;;  %v859_v54 = vpop.f32.mrb[10].mxu1  ;;  %v649_v6 = vsel %vm482_vm3, %v622_v49, 0 }
 0x1ec   :  { %v585_v56 = vadd.f32 %v859_v54, %v756_v20  ;;  %v576_v57 = vpop.f32.mrb[11].mxu1  ;;  %867 = vmatpush3.bf16.xpose.msra.mxu1 %v646_v55  ;;  %v614_v59 = vmax.f32 %v582_v51, 0.0 }
 0x1ed   :  { %v577_v58 = vadd.f32 %v756_v20, %v576_v57  ;;  %868 = vmatprep.subr.bf16.mxu1 %v951_v17  ;;  %v612_v61 = vmax.f32 %v574_v53, 0.0 }
 0x1ee   :  { %v615_v60 = vmax.f32 %v585_v56, 0.0 }
 0x1ef   :  { %v613_v62 = vmax.f32 %v577_v58, 0.0 }
 0x1f0   :  { %v625_v63 = vpack.c.bf16 %v615_v60, %v614_v59 }
 0x1f1   :  { %v624_v0 = vpack.c.bf16 %v613_v62, %v612_v61  ;;  %v862_v1 = vpop.f32.mrb[12].mxu1 }
 0x1f2   :  { %v598_v2 = vadd.f32 %v862_v1, %v756_v20  ;;  %v589_v3 = vpop.f32.mrb[13].mxu1  ;;  %v658_v19 = vsel %vm482_vm3, %v625_v63, 0 }
 0x1f3   :  { %v590_v4 = vadd.f32 %v756_v20, %v589_v3  ;;  %v863_v5 = vpop.f32.mrb[14].mxu1  ;;  %v655_v18 = vsel %vm482_vm3, %v624_v0, 0 }
 0x1f4   :  { %v601_v7 = vadd.f32 %v863_v5, %v756_v20  ;;  %v592_v8 = vpop.f32.mrb[15].mxu1  ;;  %869 = vmatpush3.bf16.xpose.msra.mxu1 %v649_v6  ;;  %v618_v10 = vmax.f32 %v598_v2, 0.0 }
 0x1f5   :  { %v593_v9 = vadd.f32 %v756_v20, %v592_v8  ;;  %870 = vmatprep.subr.bf16.mxu1 %v951_v17  ;;  %v616_v12 = vmax.f32 %v590_v4, 0.0 }
 0x1f6   :  { %v619_v11 = vmax.f32 %v601_v7, 0.0 }
 0x1f7   :  { %v617_v13 = vmax.f32 %v593_v9, 0.0 }
 0x1f8   :  { %v627_v14 = vpack.c.bf16 %v619_v11, %v618_v10 }
 0x1f9   :  { %v626_v15 = vpack.c.bf16 %v617_v13, %v616_v12 }
 0x1fa   :  { %v664_v21 = vsel %vm482_vm3, %v627_v14, 0 }
 0x1fb   :  { %v661_v20 = vsel %vm482_vm3, %v626_v15, 0 }
 0x1fc   :  { %871 = vmatpush3.bf16.xpose.msra.mxu1 %v652_v16 }
 0x1fd   :  { %872 = vmatprep.subr.bf16.mxu1 %v951_v17 }
 0x204   :  { %873 = vmatpush3.bf16.xpose.msra.mxu1 %v655_v18 }
 0x205   :  { %874 = vmatprep.subr.bf16.mxu1 %v951_v17 }
 0x20c   :  { %875 = vmatpush3.bf16.xpose.msra.mxu1 %v658_v19 }
 0x20d   :  { %876 = vmatprep.subr.bf16.mxu1 %v951_v17 }
 0x214   :  { %877 = vmatpush3.bf16.xpose.msra.mxu1 %v661_v20 }
 0x215   :  { %878 = vmatprep.subr.bf16.mxu1 %v951_v17 }
 0x21c   :  { %879 = vmatpush3.bf16.xpose.msra.mxu1 %v664_v21 }
 0x223   :  { %881 = vmatmul.mubr.msk.bf16.vlgmr.msra.gmra.mrb[16].mxu1 %vm482_vm3, %v628_v22 }
 0x2f6   :  { %v700_v28 = vpop.f32.mrb[16].mxu1 }
 0x2f7   :  { %v701_v29 = vadd.f32 %v700_v28, %v638_v27  ;;  %v882_v30 = vpop.f32.mrb[17].mxu1 }
 0x2f8   :  { %v703_v17 = vpop.f32.mrb[18].mxu1 }
 0x2f9   :  { %706 = vst [vmem:[#allocation3] sm:$0x1] %v701_v29  ;;  %v883_v31 = vpop.f32.mrb[19].mxu1 }
 0x2fa   :  { %938 = shalt.err (!%p935_p4)
}
 0x2fb   :  { %s939_s11 = scalar_lea.hbm %s1147_s9, 16 }
 0x2fc   :  { %p940_p5 = scmp.ne.s32.totalorder %s1147_s9, %s939_s11  ;;  %p943_p6 = scmp.lt.u32.totalorder %s939_s11, %s1147_s9 }
 0x2fe   :  { %p945_p7 = pnand %p943_p6, %p940_p5 }
 0x300   :  { %948 = shalt.err (!%p945_p7)
}
 0x301   :  { %716 = dma.vmem_to_hbm [thread:$0]  %s714_s28, 16, %s1147_s9, [#allocation4]  }
 0x302   :  { %949 = dma.done.wait [#allocation4], 16  }
 0x303   :  { %950 = vsyncadd [#allocation4], 4294967280 }
 0x304   :  { %720 = vsyncpa [#allocation4], 1 }

</bundles_post_ra>
